<compile_context>
chip_gen: v7x
topology: tpu7x:2x2x1
jax: 0.10.0
libtpu: 0.0.40
codegen_flags: <defaults>
</compile_context>

<pallas_src>
import functools

import jax
import jax.numpy as jnp
from jax.experimental import pallas as pl
from jax.experimental.pallas import tpu as pltpu


def _lstm_cell_kernel(x_ref, h_ref, c_ref, w_ref, u_ref, b_ref,
                      h_out_ref, c_out_ref):
    """One batch tile of the LSTM cell.

    x_ref : (TB, I)   bf16  incoming activations
    h_ref : (TB, H)   bf16  old hidden state
    c_ref : (TB, H)   f32   old cell state
    w_ref : (I, 4H)   bf16  fused input->hidden weights, gate order [i, o, f, g]
    u_ref : (H, 4H)   bf16  fused hidden->hidden weights (no bias, as in module)
    b_ref : (1, 4H)   f32   fused input->hidden biases
    h_out_ref : (TB, H) f32  new hidden state
    c_out_ref : (TB, H) f32  new cell state
    """
    H = c_ref.shape[1]

    # Fused GEMMs on the MXU: bf16 operands, f32 accumulation.
    z = (jnp.dot(x_ref[...], w_ref[...], preferred_element_type=jnp.float32)
         + jnp.dot(h_ref[...], u_ref[...], preferred_element_type=jnp.float32)
         + b_ref[...])

    # sigmoid(x) = 0.5 * (tanh(0.5 * x) + 1): one EUP op per element.
    def _sigmoid(v):
        return 0.5 * (jnp.tanh(0.5 * v) + 1.0)

    i = _sigmoid(z[:, 0 * H:1 * H])
    o = _sigmoid(z[:, 1 * H:2 * H])
    f = _sigmoid(z[:, 2 * H:3 * H])
    g = jnp.tanh(z[:, 3 * H:4 * H])

    new_c = f * c_ref[...] + i * g          # f32 cell-state update
    new_h = o * jnp.tanh(new_c)

    h_out_ref[...] = new_h.astype(h_out_ref.dtype)
    c_out_ref[...] = new_c.astype(c_out_ref.dtype)


def _round_up(n, m):
    return ((n + m - 1) // m) * m


@functools.partial(jax.jit, static_argnames=("tb",))
def lstm_cell_forward(x, old_h, old_c, W, U, b, *, tb=None):
    """One LSTM cell step. Returns (output, (new_h, new_c)) like the torch module."""
    B, I = x.shape
    H = old_h.shape[1]

    # Cast matmul operands to bf16 once here (no in-kernel cast, half the
    # activation DMA bytes); cell state and gate math stay f32.
    x_bf = x.astype(jnp.bfloat16)
    h_bf = old_h.astype(jnp.bfloat16)
    c_in = old_c.astype(jnp.float32)

    # Batch tile: one block for small batches, capped at 256 rows.
    if tb is None:
        tb = min(_round_up(B, 8), 256)
    Bp = _round_up(B, tb)
    if Bp != B:
        # TODO(synk): mask the ragged last tile in-kernel with @pl.when instead
        # of paying this XLA pad copy.
        pad = Bp - B
        x_bf = jnp.pad(x_bf, ((0, pad), (0, 0)))
        h_bf = jnp.pad(h_bf, ((0, pad), (0, 0)))
        c_in = jnp.pad(c_in, ((0, pad), (0, 0)))

    n_tiles = Bp // tb

    cost = pl.CostEstimate(
        flops=2 * Bp * (I + H) * 4 * H,
        transcendentals=5 * Bp * H,
        bytes_accessed=(W.size * W.dtype.itemsize
                        + U.size * U.dtype.itemsize
                        + b.size * b.dtype.itemsize
                        + x_bf.size * x_bf.dtype.itemsize
                        + h_bf.size * h_bf.dtype.itemsize
                        + c_in.size * 4
                        + Bp * 2 * H * 4),
    )

    new_h, new_c = pl.pallas_call(
        _lstm_cell_kernel,
        out_shape=(jax.ShapeDtypeStruct((Bp, H), jnp.float32),
                   jax.ShapeDtypeStruct((Bp, H), jnp.float32)),
        grid_spec=pltpu.PrefetchScalarGridSpec(
            num_scalar_prefetch=0,
            grid=(n_tiles,),
            in_specs=[
                pl.BlockSpec((tb, I), lambda i: (i, 0)),        # x: tiled over batch
                pl.BlockSpec((tb, H), lambda i: (i, 0)),        # old_h
                pl.BlockSpec((tb, H), lambda i: (i, 0)),        # old_c
                pl.BlockSpec((I, 4 * H), lambda i: (0, 0)),     # W: VMEM-resident
                pl.BlockSpec((H, 4 * H), lambda i: (0, 0)),     # U: VMEM-resident
                pl.BlockSpec((1, 4 * H), lambda i: (0, 0)),     # bias: VMEM-resident
            ],
            out_specs=[
                pl.BlockSpec((tb, H), lambda i: (i, 0)),        # new_h
                pl.BlockSpec((tb, H), lambda i: (i, 0)),        # new_c
            ],
        ),
        compiler_params=pltpu.CompilerParams(
            # Only megacore-split when each core gets a real batch tile.
            dimension_semantics=(("parallel",) if n_tiles > 1 else ("arbitrary",)),
            vmem_limit_bytes=48 * 1024 * 1024,                  # headroom below v7x's 64 MiB
        ),
        cost_estimate=cost,
    )(x_bf, h_bf, c_in, W, U, b)

    if Bp != B:
        new_h = new_h[:B]
        new_c = new_c[:B]
    output = new_h
    return output, (new_h, new_c)


def init_params(key, input_size, hidden_size, param_dtype=jnp.bfloat16):
    """Deterministic init matching the shapes of the PyTorch module.

    PyTorch nn.Linear(in, out) stores weight (out, in); here we store the
    transposed, gate-concatenated forms:
        W : (input_size, 4*hidden_size)   input->hidden weights (with bias)
        U : (hidden_size, 4*hidden_size)  hidden->hidden weights (bias=False)
        b : (1, 4*hidden_size)            input->hidden biases
    Gate order along the 4H axis: [input, output, forget, act] — matching the
    module's forward (NOT torch.nn.LSTMCell's [i, f, g, o]).
    Weights are stored in bf16 (MXU-native); the bias stays f32.
    """
    ks = jax.random.split(key, 12)
    bw = 1.0 / jnp.sqrt(input_size)
    bu = 1.0 / jnp.sqrt(hidden_size)
    Ws = [jax.random.uniform(ks[g], (input_size, hidden_size), jnp.float32, -bw, bw)
          for g in range(4)]
    Us = [jax.random.uniform(ks[4 + g], (hidden_size, hidden_size), jnp.float32, -bu, bu)
          for g in range(4)]
    bs = [jax.random.uniform(ks[8 + g], (hidden_size,), jnp.float32, -bw, bw)
          for g in range(4)]
    W = jnp.concatenate(Ws, axis=1).astype(param_dtype)            # (I, 4H)
    U = jnp.concatenate(Us, axis=1).astype(param_dtype)            # (H, 4H)
    b = jnp.concatenate(bs, axis=0)[None, :].astype(jnp.float32)   # (1, 4H)
    return W, U, b


def lstm_cell_reference(x, old_h, old_c, W, U, b, *, act_dtype=jnp.float32):
    """Pure-JAX reference matching the PyTorch module semantics.

    act_dtype=jnp.bfloat16 reproduces the kernel's matmul operand precision
    (f32 accumulation) for a tight numeric check; act_dtype=jnp.float32 gives
    the module-semantics sanity check.
    """
    H = old_h.shape[1]
    z = (jnp.dot(x.astype(act_dtype), W.astype(act_dtype),
                 preferred_element_type=jnp.float32)
         + jnp.dot(old_h.astype(act_dtype), U.astype(act_dtype),
                   preferred_element_type=jnp.float32)
         + b)
    i = jax.nn.sigmoid(z[:, 0 * H:1 * H])
    o = jax.nn.sigmoid(z[:, 1 * H:2 * H])
    f = jax.nn.sigmoid(z[:, 2 * H:3 * H])
    g = jnp.tanh(z[:, 3 * H:4 * H])
    new_c = f * old_c.astype(jnp.float32) + i * g
    new_h = o * jnp.tanh(new_c)
    return new_h, new_c


if __name__ == "__main__":
    key = jax.random.PRNGKey(0)
    batch, input_size, hidden_size = 16, 64, 128   # H multiple of 128 lanes, B multiple of 8

    k_params, k_x, k_h, k_c = jax.random.split(key, 4)
    W, U, b = init_params(k_params, input_size, hidden_size)

    x = jax.random.normal(k_x, (batch, input_size), jnp.float32)
    old_h = jax.random.normal(k_h, (batch, hidden_size), jnp.float32)
    old_c = jax.random.normal(k_c, (batch, hidden_size), jnp.float32)

    output, (new_h, new_c) = lstm_cell_forward(x, old_h, old_c, W, U, b)
    jax.block_until_ready((output, new_h, new_c))

    # Tight check: reference follows the same bf16-operand / f32-accumulate path.
    ref_h_bf, ref_c_bf = lstm_cell_reference(x, old_h, old_c, W, U, b,
                                             act_dtype=jnp.bfloat16)
    assert jnp.allclose(new_h, ref_h_bf, atol=1e-3, rtol=1e-3)
    assert jnp.allclose(new_c, ref_c_bf, atol=1e-3, rtol=1e-3)

    # Loose check: module semantics with f32 activations (bf16 operand cast is
    # the only difference).
    ref_h, ref_c = lstm_cell_reference(x, old_h, old_c, W, U, b,
                                       act_dtype=jnp.float32)
    assert jnp.allclose(new_h, ref_h, atol=2e-2, rtol=2e-2)
    assert jnp.allclose(new_c, ref_c, atol=2e-2, rtol=2e-2)
    assert jnp.allclose(output, new_h)

    print("KERNEL_OK")
</pallas_src>

<mosaic_0001>
module attributes {stable_mosaic.version = 11 : i64} {
  func.func @_lstm_cell_kernel(%arg0: i32, %arg1: memref<16x64xbf16, #tpu.memory_space<vmem>>, %arg2: memref<16x128xbf16, #tpu.memory_space<vmem>>, %arg3: memref<16x128xf32, #tpu.memory_space<vmem>>, %arg4: memref<64x512xbf16, #tpu.memory_space<vmem>>, %arg5: memref<128x512xbf16, #tpu.memory_space<vmem>>, %arg6: memref<1x512xf32, #tpu.memory_space<vmem>>, %arg7: memref<16x128xf32, #tpu.memory_space<vmem>>, %arg8: memref<16x128xf32, #tpu.memory_space<vmem>>) attributes {dimension_semantics = [#tpu.dimension_semantics<arbitrary>], iteration_bounds = array<i64: 1>, scalar_prefetch = 0 : i64, scratch_operands = 0 : i64, tpu.core_type = #tpu.core_type<tc>, window_params = [{transform_indices = @transform_0, window_bounds = array<i64: 16, 64>}, {transform_indices = @transform_1, window_bounds = array<i64: 16, 128>}, {transform_indices = @transform_2, window_bounds = array<i64: 16, 128>}, {pipeline_mode = #tpu.pipeline_mode<synchronous>, transform_indices = @transform_3, window_bounds = array<i64: 64, 512>}, {pipeline_mode = #tpu.pipeline_mode<synchronous>, transform_indices = @transform_4, window_bounds = array<i64: 128, 512>}, {pipeline_mode = #tpu.pipeline_mode<synchronous>, transform_indices = @transform_5, window_bounds = array<i64: 1, 512>}, {transform_indices = @transform_6, window_bounds = array<i64: 16, 128>}, {transform_indices = @transform_7, window_bounds = array<i64: 16, 128>}]} {
    %c0 = arith.constant 0 : index
    %c0_0 = arith.constant 0 : index
    %0 = vector.load %arg1[%c0, %c0_0] : memref<16x64xbf16, #tpu.memory_space<vmem>>, vector<16x64xbf16>
    %c0_1 = arith.constant 0 : index
    %c0_2 = arith.constant 0 : index
    %1 = vector.load %arg4[%c0_1, %c0_2] : memref<64x512xbf16, #tpu.memory_space<vmem>>, vector<64x512xbf16>
    %cst = arith.constant dense<0.000000e+00> : vector<16x512xf32>
    %2 = tpu.matmul %0, %1, %cst {dimension_numbers = #tpu.dot_dimension_numbers<[1], [0], [0], [1], [0, 0, 1, 1], [], []>} : vector<16x64xbf16>, vector<64x512xbf16>, vector<16x512xf32> -> vector<16x512xf32>
    %c0_3 = arith.constant 0 : index
    %c0_4 = arith.constant 0 : index
    %3 = vector.load %arg2[%c0_3, %c0_4] : memref<16x128xbf16, #tpu.memory_space<vmem>>, vector<16x128xbf16>
    %c0_5 = arith.constant 0 : index
    %c0_6 = arith.constant 0 : index
    %4 = vector.load %arg5[%c0_5, %c0_6] : memref<128x512xbf16, #tpu.memory_space<vmem>>, vector<128x512xbf16>
    %cst_7 = arith.constant dense<0.000000e+00> : vector<16x512xf32>
    %5 = tpu.matmul %3, %4, %cst_7 {dimension_numbers = #tpu.dot_dimension_numbers<[1], [0], [0], [1], [0, 0, 1, 1], [], []>} : vector<16x128xbf16>, vector<128x512xbf16>, vector<16x512xf32> -> vector<16x512xf32>
    %6 = arith.addf %2, %5 : vector<16x512xf32>
    %c0_8 = arith.constant 0 : index
    %c0_9 = arith.constant 0 : index
    %7 = vector.load %arg6[%c0_8, %c0_9] : memref<1x512xf32, #tpu.memory_space<vmem>>, vector<1x512xf32>
    %8 = vector.broadcast %7 : vector<1x512xf32> to vector<16x512xf32>
    %9 = arith.addf %6, %8 : vector<16x512xf32>
    %10 = vector.extract_strided_slice %9 {offsets = [0, 0], sizes = [16, 128], strides = [1, 1]} : vector<16x512xf32> to vector<16x128xf32>
    %cst_10 = arith.constant 5.000000e-01 : f32
    %11 = vector.broadcast %cst_10 : f32 to vector<16x128xf32>
    %12 = arith.mulf %11, %10 : vector<16x128xf32>
    %13 = math.tanh %12 : vector<16x128xf32>
    %cst_11 = arith.constant 1.000000e+00 : f32
    %14 = vector.broadcast %cst_11 : f32 to vector<16x128xf32>
    %15 = arith.addf %13, %14 : vector<16x128xf32>
    %cst_12 = arith.constant 5.000000e-01 : f32
    %16 = vector.broadcast %cst_12 : f32 to vector<16x128xf32>
    %17 = arith.mulf %16, %15 : vector<16x128xf32>
    %18 = vector.extract_strided_slice %9 {offsets = [0, 128], sizes = [16, 128], strides = [1, 1]} : vector<16x512xf32> to vector<16x128xf32>
    %cst_13 = arith.constant 5.000000e-01 : f32
    %19 = vector.broadcast %cst_13 : f32 to vector<16x128xf32>
    %20 = arith.mulf %19, %18 : vector<16x128xf32>
    %21 = math.tanh %20 : vector<16x128xf32>
    %cst_14 = arith.constant 1.000000e+00 : f32
    %22 = vector.broadcast %cst_14 : f32 to vector<16x128xf32>
    %23 = arith.addf %21, %22 : vector<16x128xf32>
    %cst_15 = arith.constant 5.000000e-01 : f32
    %24 = vector.broadcast %cst_15 : f32 to vector<16x128xf32>
    %25 = arith.mulf %24, %23 : vector<16x128xf32>
    %26 = vector.extract_strided_slice %9 {offsets = [0, 256], sizes = [16, 128], strides = [1, 1]} : vector<16x512xf32> to vector<16x128xf32>
    %cst_16 = arith.constant 5.000000e-01 : f32
    %27 = vector.broadcast %cst_16 : f32 to vector<16x128xf32>
    %28 = arith.mulf %27, %26 : vector<16x128xf32>
    %29 = math.tanh %28 : vector<16x128xf32>
    %cst_17 = arith.constant 1.000000e+00 : f32
    %30 = vector.broadcast %cst_17 : f32 to vector<16x128xf32>
    %31 = arith.addf %29, %30 : vector<16x128xf32>
    %cst_18 = arith.constant 5.000000e-01 : f32
    %32 = vector.broadcast %cst_18 : f32 to vector<16x128xf32>
    %33 = arith.mulf %32, %31 : vector<16x128xf32>
    %34 = vector.extract_strided_slice %9 {offsets = [0, 384], sizes = [16, 128], strides = [1, 1]} : vector<16x512xf32> to vector<16x128xf32>
    %35 = math.tanh %34 : vector<16x128xf32>
    %c0_19 = arith.constant 0 : index
    %c0_20 = arith.constant 0 : index
    %36 = vector.load %arg3[%c0_19, %c0_20] : memref<16x128xf32, #tpu.memory_space<vmem>>, vector<16x128xf32>
    %37 = arith.mulf %33, %36 : vector<16x128xf32>
    %38 = arith.mulf %17, %35 : vector<16x128xf32>
    %39 = arith.addf %37, %38 : vector<16x128xf32>
    %40 = math.tanh %39 : vector<16x128xf32>
    %41 = arith.mulf %25, %40 : vector<16x128xf32>
    %c0_21 = arith.constant 0 : index
    %c0_22 = arith.constant 0 : index
    %42 = vector.load %arg7[%c0_21, %c0_22] : memref<16x128xf32, #tpu.memory_space<vmem>>, vector<16x128xf32>
    tpu.vector_store %arg7[%c0_21, %c0_22], %41 {strides = array<i32>} : memref<16x128xf32, #tpu.memory_space<vmem>>, vector<16x128xf32>,
    %c0_23 = arith.constant 0 : index
    %c0_24 = arith.constant 0 : index
    %43 = vector.load %arg8[%c0_23, %c0_24] : memref<16x128xf32, #tpu.memory_space<vmem>>, vector<16x128xf32>
    tpu.vector_store %arg8[%c0_23, %c0_24], %39 {strides = array<i32>} : memref<16x128xf32, #tpu.memory_space<vmem>>, vector<16x128xf32>,
    return
  }
  func.func @transform_0(%arg0: i32) -> (i32, i32) {
    %c0_i32 = arith.constant 0 : i32
    %c0_i32_0 = arith.constant 0 : i32
    return %arg0, %c0_i32 : i32, i32
  }
  func.func @transform_1(%arg0: i32) -> (i32, i32) {
    %c0_i32 = arith.constant 0 : i32
    %c0_i32_0 = arith.constant 0 : i32
    return %arg0, %c0_i32 : i32, i32
  }
  func.func @transform_2(%arg0: i32) -> (i32, i32) {
    %c0_i32 = arith.constant 0 : i32
    %c0_i32_0 = arith.constant 0 : i32
    return %arg0, %c0_i32 : i32, i32
  }
  func.func @transform_3(%arg0: i32) -> (i32, i32) {
    %c0_i32 = arith.constant 0 : i32
    %c0_i32_0 = arith.constant 0 : i32
    %c0_i32_1 = arith.constant 0 : i32
    return %c0_i32, %c0_i32_0 : i32, i32
  }
  func.func @transform_4(%arg0: i32) -> (i32, i32) {
    %c0_i32 = arith.constant 0 : i32
    %c0_i32_0 = arith.constant 0 : i32
    %c0_i32_1 = arith.constant 0 : i32
    return %c0_i32, %c0_i32_0 : i32, i32
  }
  func.func @transform_5(%arg0: i32) -> (i32, i32) {
    %c0_i32 = arith.constant 0 : i32
    %c0_i32_0 = arith.constant 0 : i32
    %c0_i32_1 = arith.constant 0 : i32
    return %c0_i32, %c0_i32_0 : i32, i32
  }
  func.func @transform_6(%arg0: i32) -> (i32, i32) {
    %c0_i32 = arith.constant 0 : i32
    %c0_i32_0 = arith.constant 0 : i32
    return %arg0, %c0_i32 : i32, i32
  }
  func.func @transform_7(%arg0: i32) -> (i32, i32) {
    %c0_i32 = arith.constant 0 : i32
    %c0_i32_0 = arith.constant 0 : i32
    return %arg0, %c0_i32 : i32, i32
  }
}

</mosaic_0001>

<bundles_post_ra>
// kernel: lstm_cell_forward.1
= control target key start
LH: loop header
LB: loop body
LE: loop exit
PB: predicated region body
PF: predicated region fallthrough
CT: control target
= control target key end

     0   :  { %13 = vsyncpa [#allocation3], 0  ;;  %s971_s0 = inlined_call_operand.vmem [shape: bf16[16,64], index: 0, kind: input, shape index: {}]   ;;  %s972_s1 = inlined_call_operand.vmem [shape: bf16[16,128], index: 1, kind: input, shape index: {}]   ;;  %s973_s2 = inlined_call_operand.vmem [shape: f32[16,128], index: 2, kind: input, shape index: {}]   ;;  %s974_s3 = inlined_call_operand.hbm [shape: bf16[64,512], index: 3, kind: input, shape index: {}]   ;;  %s975_s4 = inlined_call_operand.hbm [shape: bf16[128,512], index: 4, kind: input, shape index: {}]   ;;  %s976_s5 = inlined_call_operand.vmem [shape: f32[1,512], index: 5, kind: input, shape index: {}]   ;;  %s977_s6 = inlined_call_operand.vmem [shape: f32[16,128], index: 6, kind: output, shape index: {0}]   ;;  %s978_s7 = inlined_call_operand.hbm [shape: f32[16,128], index: 7, kind: output, shape index: {1}]  }
   0x1   :  { %14 = vsyncpa [#allocation6], 0 }
   0x2   :  { %15 = vsyncpa [#allocation4], 0  ;;  %s862_s24 = smov [#allocation2]   ;;  %s790_s28 = scalar_lea.hbm %s974_s3, 2048 }
   0x3   :  { %s27_s25 = sshll.u32 %s862_s24, 4  ;;  %p791_p0 = scmp.ne.s32.totalorder %s974_s3, %s790_s28  ;;  %s28_s25 = int_to_ptr.vmem [resolvable:$true] %s27_s25 }
   0x4   :  { %p794_p1 = scmp.lt.u32.totalorder %s790_s28, %s974_s3 }
   0x6   :  { %p796_p2 = pnand %p794_p1, %p791_p0 }
   0x8   :  { %799 = shalt.err (!%p796_p2)
}
   0x9   :  { %s800_s10 = scalar_lea.vmem %s28_s25, 2048  ;;  %p805_p4 = scmp.lt.s32.totalorder %s28_s25, %s28_s25 }
   0xa   :  { %p801_p3 = scmp.ne.s32.totalorder %s28_s25, %s800_s10  ;;  %p806_p5 = scmp.lt.s32.totalorder %s800_s10, %s800_s10 }
   0xc   :  { %p807_p6 = por %p806_p5, %p805_p4 }
   0xe   :  { %p808_p7 = pnand %p807_p6, %p801_p3 }
  0x10   :  { %811 = shalt.err (!%p808_p7)
}
  0x11   :  { %s863_s11 = smov 256   ;;  %s864_s12 = smov 16  }
  0x12   :  { %33 = dma.hbm_to_vmem [thread:$0]  %s974_s3, 2048, %s28_s25, [#allocation3], %s863_s11, %s863_s11, %s864_s12  }
  0x13   :  { %s865_s15 = smov [#allocation5]   ;;  %s812_s19 = scalar_lea.hbm %s975_s4, 4096 }
  0x14   :  { %s39_s16 = sshll.u32 %s865_s15, 4  ;;  %p813_p8 = scmp.ne.s32.totalorder %s975_s4, %s812_s19  ;;  %s40_s16 = int_to_ptr.vmem [resolvable:$true] %s39_s16 }
  0x15   :  { %p816_p9 = scmp.lt.u32.totalorder %s812_s19, %s975_s4 }
  0x17   :  { %p818_p10 = pnand %p816_p9, %p813_p8 }
  0x19   :  { %821 = shalt.err (!%p818_p10)
}
  0x1a   :  { %s822_s24 = scalar_lea.vmem %s40_s16, 4096  ;;  %p827_p12 = scmp.lt.s32.totalorder %s40_s16, %s40_s16 }
  0x1b   :  { %p823_p11 = scmp.ne.s32.totalorder %s40_s16, %s822_s24  ;;  %p828_p13 = scmp.lt.s32.totalorder %s822_s24, %s822_s24 }
  0x1d   :  { %p829_p0 = por %p828_p13, %p827_p12 }
  0x1f   :  { %p830_p1 = pnand %p829_p0, %p823_p11 }
  0x21   :  { %833 = shalt.err (!%p830_p1)
}
  0x22   :  { %45 = dma.hbm_to_vmem [thread:$0]  %s975_s4, 4096, %s40_s16, [#allocation6], %s863_s11, %s863_s11, %s864_s12  }
  0x23   :  { %856 = dma.done.wait [#allocation3], 2048  }
  0x24   :  { %857 = vsyncadd [#allocation3], 4294965248 }
  0x25   :  { %858 = dma.done.wait [#allocation6], 4096  }
  0x26   :  { %859 = vsyncadd [#allocation6], 4294963200  ;;  %v866_v0 = vmov 0   ;;  %v696_v1 = vld [vmem:[#allocation5 + $0x4] ss:$16 sps:$4 sm:$0xff]   ;;  %vm444_vm0 = vcmask 523264   ;;  %v536_v51 = vlaneseq }
  0x27   :  { %305 = vmatprep.mubr.bf16.mxu0 %v866_v0  ;;  %348 = vmatprep.mubr.bf16.mxu1 %v866_v0  ;;  %v698_v2 = vld [vmem:[#allocation5 + $0xc] ss:$16 sps:$4 sm:$0xff]   ;;  %v700_v3 = vld [vmem:[#allocation5] ss:$16 sps:$4 sm:$0xff]   ;;  %v701_v4 = vld [vmem:[#allocation5 + $0x8] ss:$16 sps:$4 sm:$0xff]  }
  0x28   :  { %273 = vmatprep.subr.bf16.mxu0 %v696_v1  ;;  %316 = vmatprep.subr.bf16.mxu1 %v698_v2  ;;  %v702_v5 = vld [vmem:[#allocation5 + $0x24] ss:$16 sps:$4 sm:$0xff]   ;;  %v704_v6 = vld [vmem:[#allocation5 + $0x2c] ss:$16 sps:$4 sm:$0xff]   ;;  %v706_v7 = vld [vmem:[#allocation5 + $0x20] ss:$16 sps:$4 sm:$0xff]  }
  0x29   :  { %274 = vmatpush1.bf16.msra.mxu0 %v700_v3  ;;  %317 = vmatpush1.bf16.msra.mxu1 %v701_v4  ;;  %v707_v8 = vld [vmem:[#allocation5 + $0x28] ss:$16 sps:$4 sm:$0xff]   ;;  %v708_v9 = vld [vmem:[#allocation5 + $0x44] ss:$16 sps:$4 sm:$0xff]   ;;  %v710_v10 = vld [vmem:[#allocation5 + $0x4c] ss:$16 sps:$4 sm:$0xff]  }
  0x2a   :  { %275 = vmatprep.subr.bf16.mxu0 %v702_v5  ;;  %318 = vmatprep.subr.bf16.mxu1 %v704_v6  ;;  %v712_v11 = vld [vmem:[#allocation5 + $0x40] ss:$16 sps:$4 sm:$0xff]   ;;  %v713_v12 = vld [vmem:[#allocation5 + $0x48] ss:$16 sps:$4 sm:$0xff]   ;;  %v714_v13 = vld [vmem:[#allocation5 + $0x64] ss:$16 sps:$4 sm:$0xff]  }
  0x2b   :  { %v716_v14 = vld [vmem:[#allocation5 + $0x6c] ss:$16 sps:$4 sm:$0xff]   ;;  %v718_v15 = vld [vmem:[#allocation5 + $0x60] ss:$16 sps:$4 sm:$0xff]   ;;  %v719_v16 = vld [vmem:[#allocation5 + $0x68] ss:$16 sps:$4 sm:$0xff]  }
  0x2c   :  { %v720_v17 = vld [vmem:[#allocation5 + $0x84] ss:$16 sps:$4 sm:$0xff]   ;;  %v722_v18 = vld [vmem:[#allocation5 + $0x8c] ss:$16 sps:$4 sm:$0xff]   ;;  %v724_v19 = vld [vmem:[#allocation5 + $0x80] ss:$16 sps:$4 sm:$0xff]  }
  0x2d   :  { %276 = vmatpush1.bf16.msra.mxu0 %v706_v7  ;;  %319 = vmatpush1.bf16.msra.mxu1 %v707_v8  ;;  %v725_v20 = vld [vmem:[#allocation5 + $0x88] ss:$16 sps:$4 sm:$0xff]   ;;  %v726_v21 = vld [vmem:[#allocation5 + $0xa4] ss:$16 sps:$4 sm:$0xff]   ;;  %v728_v22 = vld [vmem:[#allocation5 + $0xac] ss:$16 sps:$4 sm:$0xff]  }
  0x2e   :  { %277 = vmatprep.subr.bf16.mxu0 %v708_v9  ;;  %320 = vmatprep.subr.bf16.mxu1 %v710_v10  ;;  %v730_v23 = vld [vmem:[#allocation5 + $0xa0] ss:$16 sps:$4 sm:$0xff]   ;;  %v731_v24 = vld [vmem:[#allocation5 + $0xa8] ss:$16 sps:$4 sm:$0xff]   ;;  %v732_v25 = vld [vmem:[#allocation5 + $0xc4] ss:$16 sps:$4 sm:$0xff]  }
  0x2f   :  { %v734_v26 = vld [vmem:[#allocation5 + $0xcc] ss:$16 sps:$4 sm:$0xff]   ;;  %v736_v27 = vld [vmem:[#allocation5 + $0xc0] ss:$16 sps:$4 sm:$0xff]   ;;  %v737_v28 = vld [vmem:[#allocation5 + $0xc8] ss:$16 sps:$4 sm:$0xff]  }
  0x30   :  { %v738_v29 = vld [vmem:[#allocation5 + $0xe4] ss:$16 sps:$4 sm:$0xff]   ;;  %v740_v30 = vld [vmem:[#allocation5 + $0xec] ss:$16 sps:$4 sm:$0xff]   ;;  %v742_v31 = vld [vmem:[#allocation5 + $0xe0] ss:$16 sps:$4 sm:$0xff]  }
  0x31   :  { %278 = vmatpush1.bf16.msra.mxu0 %v712_v11  ;;  %321 = vmatpush1.bf16.msra.mxu1 %v713_v12  ;;  %v743_v32 = vld [vmem:[#allocation5 + $0xe8] ss:$16 sps:$4 sm:$0xff]   ;;  %v746_v33 = vld [vmem:[#allocation2 + $0x4] ss:$16 sps:$4 sm:$0xff]   ;;  %v749_v34 = vld [vmem:[#allocation2 + $0xc] ss:$16 sps:$4 sm:$0xff]  }
  0x32   :  { %279 = vmatprep.subr.bf16.mxu0 %v714_v13  ;;  %322 = vmatprep.subr.bf16.mxu1 %v716_v14  ;;  %v744_v35 = vld [vmem:[#allocation2] ss:$16 sps:$4 sm:$0xff]   ;;  %v747_v37 = vld [vmem:[#allocation2 + $0x8] ss:$16 sps:$4 sm:$0xff]   ;;  %v753_v38 = vld [vmem:[#allocation2 + $0x24] ss:$16 sps:$4 sm:$0xff]  }
  0x33   :  { %v750_v36 = vld [vmem:[%s972_s1] sm:$0xff]   ;;  %v756_v39 = vld [vmem:[#allocation2 + $0x2c] ss:$16 sps:$4 sm:$0xff]   ;;  %v754_v41 = vld [vmem:[#allocation2 + $0x28] ss:$16 sps:$4 sm:$0xff]   ;;  %v537_v52 = vshrl.u32 %v536_v51, 7 }
  0x34   :  { %v751_v40 = vld [vmem:[#allocation2 + $0x20] ss:$16 sps:$4 sm:$0xff]   ;;  %v759_v42 = vld [vmem:[#allocation2 + $0x44] ss:$16 sps:$4 sm:$0xff]   ;;  %v762_v43 = vld [vmem:[#allocation2 + $0x4c] ss:$16 sps:$4 sm:$0xff]  }
  0x35   :  { %280 = vmatpush1.bf16.msra.mxu0 %v718_v15  ;;  %323 = vmatpush1.bf16.msra.mxu1 %v719_v16  ;;  %v757_v44 = vld [vmem:[#allocation2 + $0x40] ss:$16 sps:$4 sm:$0xff]   ;;  %v760_v45 = vld [vmem:[#allocation2 + $0x48] ss:$16 sps:$4 sm:$0xff]   ;;  %v765_v46 = vld [vmem:[#allocation2 + $0x64] ss:$16 sps:$4 sm:$0xff]  }
  0x36   :  { %281 = vmatprep.subr.bf16.mxu0 %v720_v17  ;;  %324 = vmatprep.subr.bf16.mxu1 %v722_v18  ;;  %v768_v47 = vld [vmem:[#allocation2 + $0x6c] ss:$16 sps:$4 sm:$0xff]   ;;  %v763_v48 = vld [vmem:[#allocation2 + $0x60] ss:$16 sps:$4 sm:$0xff]   ;;  %v766_v49 = vld [vmem:[#allocation2 + $0x68] ss:$16 sps:$4 sm:$0xff]  }
  0x37   :  { %v769_v50 = vld [vmem:[%s971_s0] sm:$0xff]   ;;  %v538_v53 = vsub.s32 0, %v537_v52  ;;  %v546_v54 = vsub.s32 2, %v537_v52  ;;  %v550_v56 = vsub.s32 3, %v537_v52  ;;  %v542_v1 = vsub.s32 1, %v537_v52  ;;  %s867_s9 = smov [#allocation7]  }
  0x38   :  { %v534_v55 = vld [vmem:[%s976_s5] sm:$0xf]  ;;  %s613_s10 = sshll.u32 %s867_s9, 4  ;;  %s614_s10 = int_to_ptr.vmem [resolvable:$true] %s613_s10 }
  0x39   :  { %282 = vmatpush1.bf16.msra.mxu0 %v724_v19  ;;  %325 = vmatpush1.bf16.msra.mxu1 %v725_v20  ;;  %v539_v57 = vrot.slane %v534_v55, %v538_v53  ;;  %v547_v58 = vrot.slane %v534_v55, %v546_v54  ;;  %v551_v59 = vrot.slane %v534_v55, %v550_v56  ;;  %s834_s11 = scalar_lea.vmem %s614_s10, 256  ;;  %p839_p3 = scmp.lt.s32.totalorder %s614_s10, %s614_s10 }
  0x3a   :  { %283 = vmatprep.subr.bf16.mxu0 %v726_v21  ;;  %326 = vmatprep.subr.bf16.mxu1 %v728_v22  ;;  %v543_v12 = vrot.slane %v534_v55, %v542_v1  ;;  %p835_p2 = scmp.ne.s32.totalorder %s614_s10, %s834_s11  ;;  %p840_p4 = scmp.lt.s32.totalorder %s834_s11, %s834_s11 }
  0x3c   :  { %p841_p5 = por %p840_p4, %p839_p3 }
  0x3d   :  { %284 = vmatpush1.bf16.msra.mxu0 %v730_v23  ;;  %327 = vmatpush1.bf16.msra.mxu1 %v731_v24 }
  0x3e   :  { %285 = vmatprep.subr.bf16.mxu0 %v732_v25  ;;  %328 = vmatprep.subr.bf16.mxu1 %v734_v26  ;;  %p842_p6 = pnand %p841_p5, %p835_p2 }
  0x41   :  { %286 = vmatpush1.bf16.msra.mxu0 %v736_v27  ;;  %329 = vmatpush1.bf16.msra.mxu1 %v737_v28  ;;  %v590_v27 = vld [vmem:[%s973_s2] sm:$0xff] }
  0x42   :  { %287 = vmatprep.subr.bf16.mxu0 %v738_v29  ;;  %330 = vmatprep.subr.bf16.mxu1 %v740_v30 }
  0x45   :  { %288 = vmatpush1.bf16.msra.mxu0 %v742_v31  ;;  %331 = vmatpush1.bf16.msra.mxu1 %v743_v32 }
  0x46   :  { %448 = vmatprep.subr.bf16.mxu0 %v746_v33  ;;  %491 = vmatprep.subr.bf16.mxu1 %v749_v34 }
  0x48   :  { %306 = vmatmul.mubr.bf16.vlgmr.msra.gmra.mrb[0].mxu0 %v750_v36  ;;  %349 = vmatmul.mubr.bf16.vlgmr.msra.gmra.mrb[0].mxu1 %v750_v36 }
  0x49   :  { %449 = vmatpush1.bf16.msra.mxu0 %v744_v35  ;;  %492 = vmatpush1.bf16.msra.mxu1 %v747_v37  ;;  %v591_v35 = vld [vmem:[%s973_s2 + $0x8] sm:$0xff] }
  0x4a   :  { %450 = vmatprep.subr.bf16.mxu0 %v753_v38  ;;  %493 = vmatprep.subr.bf16.mxu1 %v756_v39 }
  0x4b   :  { %480 = vmatprep.mubr.bf16.mxu0 %v866_v0  ;;  %523 = vmatprep.mubr.bf16.mxu1 %v866_v0 }
  0x4d   :  { %451 = vmatpush1.bf16.msra.mxu0 %v751_v40  ;;  %494 = vmatpush1.bf16.msra.mxu1 %v754_v41 }
  0x4e   :  { %452 = vmatprep.subr.bf16.mxu0 %v759_v42  ;;  %495 = vmatprep.subr.bf16.mxu1 %v762_v43 }
  0x51   :  { %453 = vmatpush1.bf16.msra.mxu0 %v757_v44  ;;  %496 = vmatpush1.bf16.msra.mxu1 %v760_v45 }
  0x52   :  { %454 = vmatprep.subr.bf16.mxu0 %v765_v46  ;;  %497 = vmatprep.subr.bf16.mxu1 %v768_v47 }
  0x55   :  { %455 = vmatpush1.bf16.msra.mxu0 %v763_v48  ;;  %498 = vmatpush1.bf16.msra.mxu1 %v766_v49 }
  0x58   :  { %678 = vmatmul.mubr.msk.bf16.vlgmr.msra.gmra.mrb[0].mxu0 %vm444_vm0, %v769_v50  ;;  %679 = vmatmul.mubr.msk.bf16.vlgmr.msra.gmra.mrb[0].mxu1 %vm444_vm0, %v769_v50 }
 0x12b   :  { %v482_v60 = vpop.f32.mrb[0].mxu0  ;;  %v525_v61 = vpop.f32.mrb[0].mxu1 }
 0x12c   :  { %v556_v62 = vadd.f32 %v539_v57, %v482_v60  ;;  %v558_v63 = vadd.f32 %v547_v58, %v525_v61  ;;  %v484_v0 = vpop.f32.mrb[1].mxu0  ;;  %v527_v2 = vpop.f32.mrb[1].mxu1 }
 0x12d   :  { %v559_v3 = vadd.f32 %v551_v59, %v527_v2  ;;  %v486_v4 = vpop.f32.mrb[2].mxu0  ;;  %v529_v5 = vpop.f32.mrb[2].mxu1  ;;  %v557_v16 = vadd.f32 %v543_v12, %v484_v0 }
 0x12e   :  { %v564_v6 = vmul.f32 0.5, %v556_v62  ;;  %v580_v7 = vmul.f32 0.5, %v558_v63  ;;  %v560_v8 = vadd.f32 %v539_v57, %v486_v4  ;;  %v562_v9 = vadd.f32 %v547_v58, %v529_v5  ;;  %v488_v10 = vpop.f32.mrb[3].mxu0  ;;  %v531_v11 = vpop.f32.mrb[3].mxu1 }
 0x12f   :  { %v563_v15 = vadd.f32 %v551_v59, %v531_v11  ;;  %v561_v17 = vadd.f32 %v543_v12, %v488_v10  ;;  %v572_v18 = vmul.f32 0.5, %v557_v16 }
 0x130   :  { %770 = vtanh.f32 %v564_v6  ;;  %v565_v13 = vmul.f32 0.5, %v560_v8  ;;  %v581_v14 = vmul.f32 0.5, %v562_v9 }
 0x131   :  { %772 = vtanh.f32 %v580_v7  ;;  %v573_v22 = vmul.f32 0.5, %v561_v17 }
 0x132   :  { %774 = vtanh.f32 %v559_v3 }
 0x133   :  { %776 = vtanh.f32 %v565_v13 }
 0x134   :  { %778 = vtanh.f32 %v581_v14 }
 0x135   :  { %780 = vtanh.f32 %v563_v15 }
 0x136   :  { %782 = vtanh.f32 %v572_v18 }
 0x137   :  { %784 = vtanh.f32 %v573_v22 }
 0x13a   :  { %v771_v19 = vpop.eup %770 }
 0x13b   :  { %v773_v20 = vpop.eup %772  ;;  %v568_v21 = vadd.f32 1.0, %v771_v19 }
 0x13c   :  { %v775_v23 = vpop.eup %774  ;;  %v584_v24 = vadd.f32 1.0, %v773_v20 }
 0x13d   :  { %v777_v25 = vpop.eup %776  ;;  %v570_v26 = vmul.f32 0.5, %v568_v21 }
 0x13e   :  { %v779_v28 = vpop.eup %778  ;;  %v586_v29 = vmul.f32 0.5, %v584_v24  ;;  %v569_v30 = vadd.f32 1.0, %v777_v25 }
 0x13f   :  { %v594_v31 = vmul.f32 %v775_v23, %v570_v26  ;;  %v585_v32 = vadd.f32 1.0, %v779_v28  ;;  %v781_v36 = vpop.eup %780 }
 0x140   :  { %v592_v33 = vmul.f32 %v590_v27, %v586_v29  ;;  %v571_v34 = vmul.f32 0.5, %v569_v30  ;;  %v783_v42 = vpop.eup %782 }
 0x141   :  { %v587_v37 = vmul.f32 0.5, %v585_v32 }
 0x142   :  { %v595_v38 = vmul.f32 %v781_v36, %v571_v34  ;;  %v596_v39 = vadd.f32 %v594_v31, %v592_v33 }
 0x143   :  { %v593_v40 = vmul.f32 %v591_v35, %v587_v37 }
 0x144   :  { %786 = vtanh.f32 %v596_v39  ;;  %604 = vst [vmem:[#allocation7] sm:$0xff] %v596_v39 }
 0x145   :  { %v597_v41 = vadd.f32 %v595_v38, %v593_v40 }
 0x147   :  { %788 = vtanh.f32 %v597_v41  ;;  %605 = vst [vmem:[#allocation7 + $0x8] sm:$0xff] %v597_v41 }
 0x148   :  { %845 = shalt.err (!%p842_p6)
}
 0x149   :  { %s846_s13 = scalar_lea.hbm %s978_s7, 256 }
 0x14a   :  { %p847_p7 = scmp.ne.s32.totalorder %s978_s7, %s846_s13  ;;  %p850_p8 = scmp.lt.u32.totalorder %s846_s13, %s978_s7 }
 0x14c   :  { %p852_p9 = pnand %p850_p8, %p847_p7 }
 0x14e   :  { %855 = shalt.err (!%p852_p9)
}
 0x14f   :  { %s868_s18 = smov 128   ;;  %s869_s19 = smov 8   ;;  %v785_v43 = vpop.eup %784  ;;  %v576_v44 = vadd.f32 1.0, %v783_v42 }
 0x150   :  { %619 = dma.vmem_to_hbm [thread:$0]  %s614_s10, 256, %s978_s7, [#allocation4], %s868_s18, %s868_s18, %s869_s19   ;;  %v577_v45 = vadd.f32 1.0, %v785_v43  ;;  %v787_v47 = vpop.eup %786 }
 0x151   :  { %v578_v46 = vmul.f32 0.5, %v576_v44  ;;  %v789_v50 = vpop.eup %788 }
 0x152   :  { %v579_v49 = vmul.f32 0.5, %v577_v45 }
 0x153   :  { %v600_v48 = vmul.f32 %v787_v47, %v578_v46 }
 0x154   :  { %v601_v51 = vmul.f32 %v789_v50, %v579_v49 }
 0x155   :  { %602 = vst [vmem:[%s977_s6] sm:$0xff] %v600_v48 }
 0x156   :  { %603 = vst [vmem:[%s977_s6 + $0x8] sm:$0xff] %v601_v51 }
 0x157   :  { %860 = dma.done.wait [#allocation4], 256  }
 0x158   :  { %861 = vsyncadd [#allocation4], 4294967040 }
 0x159   :  { %625 = vsyncpa [#allocation3], 1 }
 0x15a   :  { %626 = vsyncpa [#allocation6], 1 }
 0x15b   :  { %627 = vsyncpa [#allocation4], 1 }

</bundles_post_ra>
